<compile_context>
chip_gen: v5e
topology: v5e:2x2
jax: 0.10.0
libtpu: 0.0.40
codegen_flags: <defaults>
</compile_context>

<pallas_src>
import functools

import jax
import jax.numpy as jnp
from jax.experimental import pallas as pl
from jax.experimental.pallas import tpu as pltpu

EPS = 1e-5
VMEM_LIMIT_BYTES = 48 * 1024 * 1024   # budgeted against v7x's 64 MiB physical VMEM


def _round_up(x, m):
    return ((x + m - 1) // m) * m


def _pad2(a, rows, cols):
    r, c = a.shape
    if r == rows and c == cols:
        return a
    return jnp.pad(a, ((0, rows - r), (0, cols - c)))


# --------------- stage 1: Linear1 + ReLU, per-tile BN partial moments ----------------
def _stage1_kernel(x_ref, w1_ref, b1_ref, h1_ref, psum_ref, psumsq_ref,
                   *, tile_n, n_valid):
    h1 = jnp.dot(x_ref[...], w1_ref[...], preferred_element_type=jnp.float32)
    h1 = jnp.maximum(h1 + b1_ref[...], 0.0)                       # (tile_n, D)

    if n_valid % tile_n != 0:
        # zero out padded batch rows so they don't pollute the batch statistics
        row = (jax.lax.broadcasted_iota(jnp.int32, h1.shape, 0)
               + pl.program_id(0) * tile_n)
        h1 = jnp.where(row < n_valid, h1, 0.0)

    h1_ref[...] = h1
    s = jnp.sum(h1, axis=0, keepdims=True)                        # (1, D)
    ss = jnp.sum(h1 * h1, axis=0, keepdims=True)                  # (1, D)
    psum_ref[...] = s.reshape(psum_ref.shape)
    psumsq_ref[...] = ss.reshape(psumsq_ref.shape)


# --------------- stage 2: BN apply + Linear2 + ReLU + Linear3 ------------------------
def _stage2_kernel(h1_ref, scale_ref, shift_ref, w2_ref, b2_ref, w3_ref, b3_ref,
                   o_ref):
    h1n = h1_ref[...] * scale_ref[...] + shift_ref[...]           # fused BN affine
    h2 = jnp.dot(h1n, w2_ref[...], preferred_element_type=jnp.float32)
    h2 = jnp.maximum(h2 + b2_ref[...], 0.0)                       # (tile_n, D//2)
    o = jnp.dot(h2, w3_ref[...], preferred_element_type=jnp.float32) + b3_ref[...]
    o_ref[...] = o.astype(o_ref.dtype)


def decoder_forward(x, params, *, tile_n=256):
    """x: (N, E) float32; params: dict of weights/biases/bn params (see init_params)."""
    n, e = x.shape
    d = params["w1"].shape[1]
    h = params["w2"].shape[1]

    # lane-friendly padded feature dims
    e_pad = _round_up(e, 128)
    d_pad = _round_up(d, 128)
    h_pad = _round_up(h, 128)

    # batch tiling (tile_n multiple of 8 sublanes)
    tile_n = _round_up(min(tile_n, _round_up(n, 8)), 8)
    n_pad = _round_up(n, tile_n)
    n_tiles = n_pad // tile_n

    f32 = jnp.float32
    xp = _pad2(x.astype(f32), n_pad, e_pad)
    w1 = _pad2(params["w1"], e_pad, d_pad)
    b1 = _pad2(params["b1"], 1, d_pad)
    gamma = _pad2(params["gamma"], 1, d_pad)
    beta = _pad2(params["beta"], 1, d_pad)
    w2 = _pad2(params["w2"], d_pad, h_pad)
    b2 = _pad2(params["b2"], 1, h_pad)
    w3 = _pad2(params["w3"], h_pad, d_pad)
    b3 = _pad2(params["b3"], 1, d_pad)

    def const(shape):
        nd = len(shape)
        return pl.BlockSpec(shape, lambda i, _nd=nd: (0,) * _nd)

    cp = pltpu.CompilerParams(dimension_semantics=("parallel",),
                              vmem_limit_bytes=VMEM_LIMIT_BYTES)

    # ---------------- stage 1 ----------------
    stage1 = functools.partial(_stage1_kernel, tile_n=tile_n, n_valid=n)
    h1, psum, psumsq = pl.pallas_call(
        stage1,
        out_shape=(
            jax.ShapeDtypeStruct((n_pad, d_pad), f32),
            jax.ShapeDtypeStruct((n_tiles, 1, d_pad), f32),
            jax.ShapeDtypeStruct((n_tiles, 1, d_pad), f32),
        ),
        grid_spec=pltpu.PrefetchScalarGridSpec(
            num_scalar_prefetch=0,
            grid=(n_tiles,),
            in_specs=[
                pl.BlockSpec((tile_n, e_pad), lambda i: (i, 0)),   # x tile
                const((e_pad, d_pad)),                             # w1 (resident)
                const((1, d_pad)),                                 # b1 (resident)
            ],
            out_specs=(
                pl.BlockSpec((tile_n, d_pad), lambda i: (i, 0)),   # h1 tile
                pl.BlockSpec((1, 1, d_pad), lambda i: (i, 0, 0)),  # partial sum
                pl.BlockSpec((1, 1, d_pad), lambda i: (i, 0, 0)),  # partial sumsq
            ),
        ),
        compiler_params=cp,
    )(xp, w1, b1)

    # ------- finalize batch statistics (tiny: n_tiles x d_pad, one-pass moments) -------
    inv_n = 1.0 / n
    mean = jnp.sum(psum[:, 0, :], axis=0, keepdims=True) * inv_n
    var = jnp.sum(psumsq[:, 0, :], axis=0, keepdims=True) * inv_n - mean * mean
    var = jnp.maximum(var, 0.0)
    inv_std = jax.lax.rsqrt(var + EPS)
    scale = gamma * inv_std                    # (1, d_pad)
    shift = beta - mean * scale                # (1, d_pad)

    # ---------------- stage 2 ----------------
    out = pl.pallas_call(
        _stage2_kernel,
        out_shape=jax.ShapeDtypeStruct((n_pad, d_pad), f32),
        grid_spec=pltpu.PrefetchScalarGridSpec(
            num_scalar_prefetch=0,
            grid=(n_tiles,),
            in_specs=[
                pl.BlockSpec((tile_n, d_pad), lambda i: (i, 0)),   # h1 tile
                const((1, d_pad)), const((1, d_pad)),              # scale, shift
                const((d_pad, h_pad)), const((1, h_pad)),          # w2, b2
                const((h_pad, d_pad)), const((1, d_pad)),          # w3, b3
            ],
            out_specs=pl.BlockSpec((tile_n, d_pad), lambda i: (i, 0)),
        ),
        compiler_params=cp,
    )(h1, scale, shift, w2, b2, w3, b3)

    return out[:n, :d]


def init_params(key, embedding_dim, out_dim):
    """Deterministic init mimicking PyTorch Linear defaults (uniform +/- 1/sqrt(fan_in))."""
    ks = jax.random.split(key, 6)
    half = out_dim // 2

    def lin(kw, kb, fan_in, fan_out):
        bound = 1.0 / jnp.sqrt(fan_in)
        w = jax.random.uniform(kw, (fan_in, fan_out), jnp.float32, -bound, bound)
        b = jax.random.uniform(kb, (1, fan_out), jnp.float32, -bound, bound)
        return w, b

    w1, b1 = lin(ks[0], ks[1], embedding_dim, out_dim)
    w2, b2 = lin(ks[2], ks[3], out_dim, half)
    w3, b3 = lin(ks[4], ks[5], half, out_dim)
    return dict(
        w1=w1, b1=b1,
        gamma=jnp.ones((1, out_dim), jnp.float32),
        beta=jnp.zeros((1, out_dim), jnp.float32),
        w2=w2, b2=b2,
        w3=w3, b3=b3,
    )


def decoder_reference(x, p):
    h1 = jnp.maximum(x @ p["w1"] + p["b1"], 0.0)
    mean = jnp.mean(h1, axis=0, keepdims=True)
    var = jnp.mean((h1 - mean) ** 2, axis=0, keepdims=True)
    h1 = (h1 - mean) / jnp.sqrt(var + EPS) * p["gamma"] + p["beta"]
    h2 = jnp.maximum(h1 @ p["w2"] + p["b2"], 0.0)
    return h2 @ p["w3"] + p["b3"]


if __name__ == "__main__":
    key = jax.random.PRNGKey(0)
    kx, kp, kx2 = jax.random.split(key, 3)

    batch, embedding_dim, out_dim = 8, 32, 64
    params = init_params(kp, embedding_dim, out_dim)

    # config 1: small batch, single tile
    x = jax.random.normal(kx, (batch, embedding_dim), jnp.float32)
    out = jax.block_until_ready(decoder_forward(x, params))
    ref = decoder_reference(x, params)
    assert out.shape == (batch, out_dim)
    assert jnp.allclose(out, ref, atol=1e-4, rtol=1e-4), "mismatch vs reference (cfg1)"

    # config 2: multi-tile grid + ragged batch (exercises cross-tile BN stats & masking)
    batch2 = 20
    x2 = jax.random.normal(kx2, (batch2, embedding_dim), jnp.float32)
    out2 = jax.block_until_ready(decoder_forward(x2, params, tile_n=8))
    ref2 = decoder_reference(x2, params)
    assert out2.shape == (batch2, out_dim)
    assert jnp.allclose(out2, ref2, atol=1e-4, rtol=1e-4), "mismatch vs reference (cfg2)"

    print("KERNEL_OK")
</pallas_src>

<mosaic_0001>
module attributes {stable_mosaic.version = 11 : i64} {
  func.func @_stage1_kernel(%arg0: i32, %arg1: memref<8x128xf32, #tpu.memory_space<vmem>>, %arg2: memref<128x128xf32, #tpu.memory_space<vmem>>, %arg3: memref<1x128xf32, #tpu.memory_space<vmem>>, %arg4: memref<8x128xf32, #tpu.memory_space<vmem>>, %arg5: memref<1x1x128xf32, #tpu.memory_space<vmem>>, %arg6: memref<1x1x128xf32, #tpu.memory_space<vmem>>) attributes {dimension_semantics = [#tpu.dimension_semantics<parallel>], iteration_bounds = array<i64: 1>, scalar_prefetch = 0 : i64, scratch_operands = 0 : i64, tpu.core_type = #tpu.core_type<tc>, window_params = [{transform_indices = @transform_0, window_bounds = array<i64: 8, 128>}, {pipeline_mode = #tpu.pipeline_mode<synchronous>, transform_indices = @transform_1, window_bounds = array<i64: 128, 128>}, {pipeline_mode = #tpu.pipeline_mode<synchronous>, transform_indices = @transform_2, window_bounds = array<i64: 1, 128>}, {transform_indices = @transform_3, window_bounds = array<i64: 8, 128>}, {transform_indices = @transform_4, window_bounds = array<i64: 1, 1, 128>}, {transform_indices = @transform_5, window_bounds = array<i64: 1, 1, 128>}]} {
    %c0 = arith.constant 0 : index
    %c0_0 = arith.constant 0 : index
    %0 = vector.load %arg1[%c0, %c0_0] : memref<8x128xf32, #tpu.memory_space<vmem>>, vector<8x128xf32>
    %c0_1 = arith.constant 0 : index
    %c0_2 = arith.constant 0 : index
    %1 = vector.load %arg2[%c0_1, %c0_2] : memref<128x128xf32, #tpu.memory_space<vmem>>, vector<128x128xf32>
    %cst = arith.constant dense<0.000000e+00> : vector<8x128xf32>
    %2 = tpu.matmul %0, %1, %cst {dimension_numbers = #tpu.dot_dimension_numbers<[1], [0], [0], [1], [0, 0, 1, 1], [], []>} : vector<8x128xf32>, vector<128x128xf32>, vector<8x128xf32> -> vector<8x128xf32>
    %c0_3 = arith.constant 0 : index
    %c0_4 = arith.constant 0 : index
    %3 = vector.load %arg3[%c0_3, %c0_4] : memref<1x128xf32, #tpu.memory_space<vmem>>, vector<1x128xf32>
    %4 = vector.broadcast %3 : vector<1x128xf32> to vector<8x128xf32>
    %5 = arith.addf %2, %4 : vector<8x128xf32>
    %cst_5 = arith.constant 0.000000e+00 : f32
    %6 = vector.broadcast %cst_5 : f32 to vector<8x128xf32>
    %7 = arith.maximumf %5, %6 : vector<8x128xf32>
    %c0_6 = arith.constant 0 : index
    %c0_7 = arith.constant 0 : index
    %8 = vector.load %arg4[%c0_6, %c0_7] : memref<8x128xf32, #tpu.memory_space<vmem>>, vector<8x128xf32>
    tpu.vector_store %arg4[%c0_6, %c0_7], %7 {strides = array<i32>} : memref<8x128xf32, #tpu.memory_space<vmem>>, vector<8x128xf32>,
    %cst_8 = arith.constant dense<0.000000e+00> : vector<128xf32>
    %9 = vector.multi_reduction <add>, %7, %cst_8 [0] : vector<8x128xf32> to vector<128xf32>
    %10 = vector.shape_cast %9 : vector<128xf32> to vector<1x128xf32>
    %11 = arith.mulf %7, %7 : vector<8x128xf32>
    %cst_9 = arith.constant dense<0.000000e+00> : vector<128xf32>
    %12 = vector.multi_reduction <add>, %11, %cst_9 [0] : vector<8x128xf32> to vector<128xf32>
    %13 = vector.shape_cast %12 : vector<128xf32> to vector<1x128xf32>
    %14 = vector.shape_cast %10 : vector<1x128xf32> to vector<1x1x128xf32>
    %c0_10 = arith.constant 0 : index
    %c0_11 = arith.constant 0 : index
    %c0_12 = arith.constant 0 : index
    %15 = vector.load %arg5[%c0_10, %c0_11, %c0_12] : memref<1x1x128xf32, #tpu.memory_space<vmem>>, vector<1x1x128xf32>
    tpu.vector_store %arg5[%c0_10, %c0_11, %c0_12], %14 {strides = array<i32>} : memref<1x1x128xf32, #tpu.memory_space<vmem>>, vector<1x1x128xf32>,
    %16 = vector.shape_cast %13 : vector<1x128xf32> to vector<1x1x128xf32>
    %c0_13 = arith.constant 0 : index
    %c0_14 = arith.constant 0 : index
    %c0_15 = arith.constant 0 : index
    %17 = vector.load %arg6[%c0_13, %c0_14, %c0_15] : memref<1x1x128xf32, #tpu.memory_space<vmem>>, vector<1x1x128xf32>
    tpu.vector_store %arg6[%c0_13, %c0_14, %c0_15], %16 {strides = array<i32>} : memref<1x1x128xf32, #tpu.memory_space<vmem>>, vector<1x1x128xf32>,
    return
  }
  func.func @transform_0(%arg0: i32) -> (i32, i32) {
    %c0_i32 = arith.constant 0 : i32
    %c0_i32_0 = arith.constant 0 : i32
    return %arg0, %c0_i32 : i32, i32
  }
  func.func @transform_1(%arg0: i32) -> (i32, i32) {
    %c0_i32 = arith.constant 0 : i32
    %c0_i32_0 = arith.constant 0 : i32
    %c0_i32_1 = arith.constant 0 : i32
    return %c0_i32, %c0_i32_0 : i32, i32
  }
  func.func @transform_2(%arg0: i32) -> (i32, i32) {
    %c0_i32 = arith.constant 0 : i32
    %c0_i32_0 = arith.constant 0 : i32
    %c0_i32_1 = arith.constant 0 : i32
    return %c0_i32, %c0_i32_0 : i32, i32
  }
  func.func @transform_3(%arg0: i32) -> (i32, i32) {
    %c0_i32 = arith.constant 0 : i32
    %c0_i32_0 = arith.constant 0 : i32
    return %arg0, %c0_i32 : i32, i32
  }
  func.func @transform_4(%arg0: i32) -> (i32, i32, i32) {
    %c0_i32 = arith.constant 0 : i32
    %c0_i32_0 = arith.constant 0 : i32
    %c0_i32_1 = arith.constant 0 : i32
    return %arg0, %c0_i32, %c0_i32_0 : i32, i32, i32
  }
  func.func @transform_5(%arg0: i32) -> (i32, i32, i32) {
    %c0_i32 = arith.constant 0 : i32
    %c0_i32_0 = arith.constant 0 : i32
    %c0_i32_1 = arith.constant 0 : i32
    return %arg0, %c0_i32, %c0_i32_0 : i32, i32, i32
  }
}

</mosaic_0001>

<bundles_post_ra>
// kernel: tpu_custom_call.1
= control target key start
LH: loop header
LB: loop body
LE: loop exit
PB: predicated region body
PF: predicated region fallthrough
CT: control target
= control target key end

     0   :  { %11 = vsyncpa [#allocation3], 0  ;;  %s347_s0 = inlined_call_operand.hbm [shape: f32[8,128], index: 0, kind: input, shape index: {}]   ;;  %s348_s1 = inlined_call_operand.hbm [shape: f32[128,128], index: 1, kind: input, shape index: {}]   ;;  %s349_s2 = inlined_call_operand.vmem [shape: f32[1,128], index: 2, kind: input, shape index: {}]   ;;  %s350_s3 = inlined_call_operand.hbm [shape: f32[8,128], index: 3, kind: output, shape index: {0}]   ;;  %s351_s4 = inlined_call_operand.hbm [shape: f32[1,1,128], index: 4, kind: output, shape index: {1}]   ;;  %s352_s5 = inlined_call_operand.hbm [shape: f32[1,1,128], index: 5, kind: output, shape index: {2}]  }
   0x1   :  { %12 = vsyncpa [#allocation6], 0 }
   0x2   :  { %13 = vsyncpa [#allocation4], 0 }
   0x3   :  { %14 = vsyncpa [#allocation9], 0  ;;  %s20_s20 = sshll.u32 %s347_s0, 4  ;;  %s292_s21 = smov [#allocation2]   ;;  %s21_s20 = int_to_ptr.hbm [resolvable:$true] %s20_s20 }
   0x4   :  { %s22_s22 = sshll.u32 %s292_s21, 4  ;;  %s30_s25 = sshll.u32 %s348_s1, 4  ;;  %s23_s22 = int_to_ptr.vmem [resolvable:$true] %s22_s22  ;;  %s31_s25 = int_to_ptr.hbm [resolvable:$true] %s30_s25 }
   0x5   :  { %25 = dma.hbm_to_vmem [thread:$0]  %s21_s20, 128, %s23_s22, [#allocation3]  }
   0x6   :  { %s293_s26 = smov [#allocation5]   ;;  %s294_s28 = smov 128  }
   0x7   :  { %s32_s27 = sshll.u32 %s293_s26, 4  ;;  %s295_s29 = smov 8   ;;  %s33_s27 = int_to_ptr.vmem [resolvable:$true] %s32_s27 }
   0x8   :  { %38 = dma.hbm_to_vmem [thread:$0]  %s31_s25, 2048, %s33_s27, [#allocation6], %s294_s28, %s294_s28, %s295_s29  }
   0x9   :  { %284 = dma.done.wait [#allocation3], 128  }
   0xa   :  { %285 = vsyncadd [#allocation3], 4294967168 }
   0xb   :  { %286 = dma.done.wait [#allocation6], 2048  }
   0xc   :  { %287 = vsyncadd [#allocation6], 4294965248  ;;  %v65_v0 = vld [vmem:[#allocation5 + $0x78] sm:$0xff]  ;;  %v64_v1 = vld [vmem:[#allocation5 + $0x70] sm:$0xff]  ;;  %s296_s30 = smov [#allocation7]   ;;  %s114_s9 = sshll.u32 %s350_s3, 4  ;;  %s115_s9 = int_to_ptr.hbm [resolvable:$true] %s114_s9 }
   0xd   :  { %70 = vmatpush.msra.mxu0 %v65_v0  ;;  %v63_v2 = vld [vmem:[#allocation5 + $0x68] sm:$0xff]  ;;  %v62_v3 = vld [vmem:[#allocation5 + $0x60] sm:$0xff]  ;;  %v61_v4 = vld [vmem:[#allocation5 + $0x58] sm:$0xff]  ;;  %s112_s6 = sshll.u32 %s296_s30, 4  ;;  %s125_s3 = sshll.u32 %s351_s4, 4  ;;  %s113_s6 = int_to_ptr.vmem [resolvable:$true] %s112_s6  ;;  %s126_s3 = int_to_ptr.hbm [resolvable:$true] %s125_s3 }
   0xe   :  { %v60_v5 = vld [vmem:[#allocation5 + $0x50] sm:$0xff]  ;;  %v59_v6 = vld [vmem:[#allocation5 + $0x48] sm:$0xff]  ;;  %v58_v7 = vld [vmem:[#allocation5 + $0x40] sm:$0xff]  ;;  %s298_s13 = smov [#allocation10]   ;;  %s136_s17 = sshll.u32 %s352_s5, 4  ;;  %s137_s17 = int_to_ptr.hbm [resolvable:$true] %s136_s17 }
   0xf   :  { %71 = vmatpush.msra.mxu0 %v64_v1  ;;  %v57_v8 = vld [vmem:[#allocation5 + $0x38] sm:$0xff]  ;;  %v56_v9 = vld [vmem:[#allocation5 + $0x30] sm:$0xff]  ;;  %v55_v10 = vld [vmem:[#allocation5 + $0x28] sm:$0xff]  ;;  %s134_s14 = sshll.u32 %s298_s13, 4  ;;  %s135_s14 = int_to_ptr.vmem [resolvable:$true] %s134_s14 }
  0x10   :  { %v54_v11 = vld [vmem:[#allocation5 + $0x20] sm:$0xff]  ;;  %v53_v12 = vld [vmem:[#allocation5 + $0x18] sm:$0xff]  ;;  %v52_v13 = vld [vmem:[#allocation5 + $0x10] sm:$0xff] }
  0x11   :  { %72 = vmatpush.msra.mxu0 %v63_v2  ;;  %v51_v14 = vld [vmem:[#allocation5 + $0x8] sm:$0xff]  ;;  %v50_v15 = vld [vmem:[#allocation5] sm:$0xff]  ;;  %v49_v16 = vld [vmem:[#allocation2] sm:$0xff] }
  0x12   :  { %v163_v17 = vld [vmem:[%s349_s2] ss:$0 sm:$0xff]  ;;  %s297_s2 = smov [#allocation8]  }
  0x13   :  { %73 = vmatpush.msra.mxu0 %v62_v3  ;;  %s123_s10 = sshll.u32 %s297_s2, 4  ;;  %s124_s10 = int_to_ptr.vmem [resolvable:$true] %s123_s10 }
  0x15   :  { %74 = vmatpush.msra.mxu0 %v61_v4 }
  0x17   :  { %75 = vmatpush.msra.mxu0 %v60_v5 }
  0x19   :  { %76 = vmatpush.msra.mxu0 %v59_v6 }
  0x1b   :  { %77 = vmatpush.msra.mxu0 %v58_v7 }
  0x1d   :  { %78 = vmatpush.msra.mxu0 %v57_v8 }
  0x1f   :  { %79 = vmatpush.msra.mxu0 %v56_v9 }
  0x21   :  { %80 = vmatpush.msra.mxu0 %v55_v10 }
  0x23   :  { %81 = vmatpush.msra.mxu0 %v54_v11 }
  0x25   :  { %82 = vmatpush.msra.mxu0 %v53_v12 }
  0x27   :  { %83 = vmatpush.msra.mxu0 %v52_v13 }
  0x29   :  { %84 = vmatpush.msra.mxu0 %v51_v14 }
  0x2b   :  { %85 = vmatpush.msra.mxu0 %v50_v15 }
  0x2c   :  { %86 = vmatmul.f32.vlgmr.msra.gmra.mxu0 %v49_v16 }
  0xa9   :  { %v87_v18 = vpop.f32.mrf.mxu0 }
  0xaa   :  { %v88_v19 = vadd.f32 %v163_v17, %v87_v18 }
  0xac   :  { %v90_v20 = vmax.f32 %v88_v19, 0.0 }
  0xae   :  { %v92_v21 = vrot.slane %v90_v20, 4  ;;  %v98_v22 = vmul.f32 %v90_v20, %v90_v20  ;;  %91 = vst [vmem:[#allocation7] sm:$0xff] %v90_v20 }
  0xaf   :  { %117 = dma.vmem_to_hbm [thread:$0]  %s113_s6, 128, %s115_s9, [#allocation4]  }
  0xb0   :  { %v93_v23 = vadd.f32 %v92_v21, %v90_v20  ;;  %v99_v24 = vrot.slane %v98_v22, 4 }
  0xb2   :  { %v100_v25 = vadd.f32 %v99_v24, %v98_v22  ;;  %v94_v26 = vrot.slane %v93_v23, 2 }
  0xb4   :  { %v95_v27 = vadd.f32 %v94_v26, %v93_v23  ;;  %v101_v28 = vrot.slane %v100_v25, 2 }
  0xb6   :  { %v96_v29 = vrot.slane %v95_v27, 1  ;;  %v102_v30 = vadd.f32 %v101_v28, %v100_v25 }
  0xb8   :  { %v97_v31 = vadd.f32 %v96_v29, %v95_v27  ;;  %v103_v32 = vrot.slane %v102_v30, 1 }
  0xba   :  { %105 = vst [vmem:[#allocation8] sm:$0x1] %v97_v31  ;;  %v104_v33 = vadd.f32 %v103_v32, %v102_v30 }
  0xbb   :  { %128 = dma.vmem_to_hbm [thread:$0]  %s124_s10, 16, %s126_s3, [#allocation9]  }
  0xbc   :  { %106 = vst [vmem:[#allocation10] sm:$0x1] %v104_v33 }
  0xbd   :  { %139 = dma.vmem_to_hbm [thread:$0]  %s135_s14, 16, %s137_s17, [#allocation9]  }
  0xbe   :  { %288 = dma.done.wait [#allocation4], 128  }
  0xbf   :  { %289 = vsyncadd [#allocation4], 4294967168 }
  0xc0   :  { %290 = dma.done.wait [#allocation9], 32  }
  0xc1   :  { %291 = vsyncadd [#allocation9], 4294967264 }
  0xc2   :  { %152 = vsyncpa [#allocation3], 1 }
  0xc3   :  { %153 = vsyncpa [#allocation6], 1 }
  0xc4   :  { %154 = vsyncpa [#allocation4], 1 }
  0xc5   :  { %155 = vsyncpa [#allocation9], 1 }

</bundles_post_ra>
